<compile_context>
chip_gen: v5e
topology: v5e:2x2
jax: 0.10.0
libtpu: 0.0.40
codegen_flags: <defaults>
</compile_context>

<pallas_src>
import functools

import jax
import jax.numpy as jnp
from jax.experimental import pallas as pl
from jax.experimental.pallas import tpu as pltpu


def _upsample_conv_relu_kernel(x_ref, w_ref, b_ref, o_ref, *,
                               out_samples, kernel_size, pad_l, compute_dtype):
    # x_ref: (N, C_in, L)        original input, time on the lane axis
    # w_ref: (C_out, K*C_in)     im2col-folded weights, row order (k, ci)
    # b_ref: (C_out, 1)
    # o_ref: (N, C_out, S)       phase-blocked along time: [evens | odds]
    n, c_in, _ = x_ref.shape
    s = out_samples
    s_even = (s + 1) // 2            # number of even output positions
    s_odd = s // 2                   # number of odd output positions

    x = x_ref[...]                   # (N, C_in, L)

    # Build the im2col matrix for all batches and both phases directly from x.
    # out[t] = sum_k w[k] * x[(t + k - pad_l) // 2]   (zero outside [0, S))
    # For t = 2u + r this is a plain shifted copy of x per (r, k): the 2x
    # nearest upsample, crop and 'same' pad reduce to the static index
    # arithmetic below (no upsampled tensor is ever built).
    col_blocks = []                  # lane order: b0-even | b0-odd | b1-even | ...
    for b in range(n):
        xb = x[b]                    # (C_in, L)
        for r, s_r in ((0, s_even), (1, s_odd)):
            if s_r == 0:
                continue
            taps = []
            for k in range(kernel_size):
                c = r + k - pad_l                     # tap shift (upsampled coords)
                u_lo = max(0, -(c // 2))              # first valid output col
                u_hi = min(s_r, (s + 1 - c) // 2)     # one past last valid col
                if u_lo >= u_hi:
                    taps.append(jnp.zeros((c_in, s_r), x.dtype))
                    continue
                pieces = []
                if u_lo > 0:
                    pieces.append(jnp.zeros((c_in, u_lo), x.dtype))
                pieces.append(xb[:, u_lo + c // 2:u_hi + c // 2])
                if s_r - u_hi > 0:
                    pieces.append(jnp.zeros((c_in, s_r - u_hi), x.dtype))
                taps.append(pieces[0] if len(pieces) == 1
                            else jnp.concatenate(pieces, axis=-1))
            block = taps[0] if kernel_size == 1 else jnp.concatenate(taps, axis=0)
            col_blocks.append(block)                  # (K*C_in, s_r)
    cols = (col_blocks[0] if len(col_blocks) == 1
            else jnp.concatenate(col_blocks, axis=-1))  # (K*C_in, N*S)

    w = w_ref[...]                                      # (C_out, K*C_in)
    if compute_dtype is not None:                       # optional bf16 MXU path
        cols = cols.astype(compute_dtype)
        w = w.astype(compute_dtype)

    # One matmul for the whole block; f32 accumulation; bias folded in once.
    acc = jnp.dot(w, cols, preferred_element_type=jnp.float32)   # (C_out, N*S)
    acc = acc + b_ref[...].astype(jnp.float32)                   # lane broadcast
    res = jnp.maximum(acc, 0.0).astype(o_ref.dtype)

    for b in range(n):                                  # dense (C_out, S) stores
        o_ref[b] = res[:, b * s:(b + 1) * s]


def upsampling_block_forward(x, weight, bias, *, out_samples, kernel_size,
                             compute_dtype=None):
    """x: (N, C_in, L). weight: (C_out, C_in, K). bias: (C_out,). -> (N, C_out, S)."""
    n, c_in, l_in = x.shape
    c_out, c_in_w, k_w = weight.shape
    assert c_in_w == c_in and k_w == kernel_size
    assert out_samples <= 2 * l_in, "crop assumes out_samples <= 2 * L"
    pad_l = (kernel_size - 1) // 2

    # Tiny parameter reshapes only (no data-tensor preprocessing).
    w_col = jnp.transpose(weight, (0, 2, 1)).reshape(c_out, kernel_size * c_in)
    b_col = bias.reshape(c_out, 1)

    kernel = functools.partial(
        _upsample_conv_relu_kernel,
        out_samples=out_samples, kernel_size=kernel_size, pad_l=pad_l,
        compute_dtype=compute_dtype)

    out_blocked = pl.pallas_call(
        kernel,
        out_shape=jax.ShapeDtypeStruct((n, c_out, out_samples), x.dtype),
        in_specs=[pl.BlockSpec(memory_space=pltpu.MemorySpace.VMEM)] * 3,
        out_specs=pl.BlockSpec(memory_space=pltpu.MemorySpace.VMEM),
    )(x, w_col, b_col)

    # De-block the time axis: [evens | odds] -> interleaved (cheap fixed XLA
    # permutation of the output; everything else already ran in the kernel).
    s_even = (out_samples + 1) // 2
    t = jnp.arange(out_samples)
    perm = jnp.where(t % 2 == 0, t // 2, s_even + t // 2)
    return jnp.take(out_blocked, perm, axis=-1)


def _reference_forward(x, weight, bias, *, out_samples, kernel_size):
    """Pure-jnp reference reproducing the PyTorch forward."""
    x_up = jnp.repeat(x, 2, axis=2)[:, :, :out_samples]
    pad_l = (kernel_size - 1) // 2
    pad_r = kernel_size - 1 - pad_l
    x_pad = jnp.pad(x_up, ((0, 0), (0, 0), (pad_l, pad_r)))
    windows = jnp.stack(
        [x_pad[:, :, k:k + out_samples] for k in range(kernel_size)], axis=-1
    )  # (N, C_in, S, K)
    y = jnp.einsum("ncsk,ock->nos", windows, weight) + bias[None, :, None]
    return jnp.maximum(y, 0.0)


if __name__ == "__main__":
    in_channels = 4
    out_channels = 8
    out_samples = 16
    kernel_size = 3
    batch = 2
    l_in = 8  # upsampled x2 -> 16 == out_samples

    key = jax.random.PRNGKey(0)
    kx, kw, kb = jax.random.split(key, 3)

    x = jax.random.normal(kx, (batch, in_channels, l_in), dtype=jnp.float32)

    # deterministic Conv1d-style init (uniform in +-1/sqrt(fan_in))
    fan_in = in_channels * kernel_size
    bound = 1.0 / (fan_in ** 0.5)
    weight = jax.random.uniform(
        kw, (out_channels, in_channels, kernel_size),
        minval=-bound, maxval=bound, dtype=jnp.float32)
    bias = jax.random.uniform(
        kb, (out_channels,), minval=-bound, maxval=bound, dtype=jnp.float32)
    # TODO(synk): kernel_l1_alpha / bias_l1_alpha register backward gradient
    # hooks (training-time only); there is no forward-pass equivalent.

    y = upsampling_block_forward(
        x, weight, bias, out_samples=out_samples, kernel_size=kernel_size)
    y = jax.block_until_ready(y)

    y_ref = _reference_forward(
        x, weight, bias, out_samples=out_samples, kernel_size=kernel_size)
    assert y.shape == (batch, out_channels, out_samples), y.shape
    assert jnp.allclose(y, y_ref, atol=1e-5, rtol=1e-5), "mismatch vs reference"

    print("KERNEL_OK")
</pallas_src>

<mosaic_0001>
module attributes {stable_mosaic.version = 11 : i64} {
  func.func @_upsample_conv_relu_kernel(%arg0: memref<2x4x8xf32, #tpu.memory_space<vmem>>, %arg1: memref<8x12xf32, #tpu.memory_space<vmem>>, %arg2: memref<8x1xf32, #tpu.memory_space<vmem>>, %arg3: memref<2x8x16xf32, #tpu.memory_space<vmem>>) attributes {dimension_semantics = [], scalar_prefetch = 0 : i64, scratch_operands = 0 : i64, tpu.core_type = #tpu.core_type<tc>} {
    %c0 = arith.constant 0 : index
    %c0_0 = arith.constant 0 : index
    %c0_1 = arith.constant 0 : index
    %0 = vector.load %arg0[%c0, %c0_0, %c0_1] : memref<2x4x8xf32, #tpu.memory_space<vmem>>, vector<2x4x8xf32>
    %1 = vector.extract_strided_slice %0 {offsets = [0, 0, 0], sizes = [1, 4, 8], strides = [1, 1, 1]} : vector<2x4x8xf32> to vector<1x4x8xf32>
    %2 = vector.shape_cast %1 : vector<1x4x8xf32> to vector<4x8xf32>
    %cst = arith.constant 0.000000e+00 : f32
    %3 = vector.broadcast %cst : f32 to vector<4x1xf32>
    %4 = vector.extract_strided_slice %2 {offsets = [0, 0], sizes = [4, 7], strides = [1, 1]} : vector<4x8xf32> to vector<4x7xf32>
    %5 = tpu.concatenate %3, %4 in 1 : vector<4x1xf32>, vector<4x7xf32> -> vector<4x8xf32>
    %6 = tpu.concatenate %5, %2, %2 in 0 : vector<4x8xf32>, vector<4x8xf32>, vector<4x8xf32> -> vector<12x8xf32>
    %7 = vector.extract_strided_slice %2 {offsets = [0, 1], sizes = [4, 7], strides = [1, 1]} : vector<4x8xf32> to vector<4x7xf32>
    %cst_2 = arith.constant 0.000000e+00 : f32
    %8 = vector.broadcast %cst_2 : f32 to vector<4x1xf32>
    %9 = tpu.concatenate %7, %8 in 1 : vector<4x7xf32>, vector<4x1xf32> -> vector<4x8xf32>
    %10 = tpu.concatenate %2, %2, %9 in 0 : vector<4x8xf32>, vector<4x8xf32>, vector<4x8xf32> -> vector<12x8xf32>
    %11 = vector.extract_strided_slice %0 {offsets = [1, 0, 0], sizes = [1, 4, 8], strides = [1, 1, 1]} : vector<2x4x8xf32> to vector<1x4x8xf32>
    %12 = vector.shape_cast %11 : vector<1x4x8xf32> to vector<4x8xf32>
    %cst_3 = arith.constant 0.000000e+00 : f32
    %13 = vector.broadcast %cst_3 : f32 to vector<4x1xf32>
    %14 = vector.extract_strided_slice %12 {offsets = [0, 0], sizes = [4, 7], strides = [1, 1]} : vector<4x8xf32> to vector<4x7xf32>
    %15 = tpu.concatenate %13, %14 in 1 : vector<4x1xf32>, vector<4x7xf32> -> vector<4x8xf32>
    %16 = tpu.concatenate %15, %12, %12 in 0 : vector<4x8xf32>, vector<4x8xf32>, vector<4x8xf32> -> vector<12x8xf32>
    %17 = vector.extract_strided_slice %12 {offsets = [0, 1], sizes = [4, 7], strides = [1, 1]} : vector<4x8xf32> to vector<4x7xf32>
    %cst_4 = arith.constant 0.000000e+00 : f32
    %18 = vector.broadcast %cst_4 : f32 to vector<4x1xf32>
    %19 = tpu.concatenate %17, %18 in 1 : vector<4x7xf32>, vector<4x1xf32> -> vector<4x8xf32>
    %20 = tpu.concatenate %12, %12, %19 in 0 : vector<4x8xf32>, vector<4x8xf32>, vector<4x8xf32> -> vector<12x8xf32>
    %21 = tpu.concatenate %6, %10, %16, %20 in 1 : vector<12x8xf32>, vector<12x8xf32>, vector<12x8xf32>, vector<12x8xf32> -> vector<12x32xf32>
    %c0_5 = arith.constant 0 : index
    %c0_6 = arith.constant 0 : index
    %22 = vector.load %arg1[%c0_5, %c0_6] : memref<8x12xf32, #tpu.memory_space<vmem>>, vector<8x12xf32>
    %cst_7 = arith.constant dense<0.000000e+00> : vector<8x32xf32>
    %23 = tpu.matmul %22, %21, %cst_7 {dimension_numbers = #tpu.dot_dimension_numbers<[1], [0], [0], [1], [0, 0, 1, 1], [], []>} : vector<8x12xf32>, vector<12x32xf32>, vector<8x32xf32> -> vector<8x32xf32>
    %c0_8 = arith.constant 0 : index
    %c0_9 = arith.constant 0 : index
    %24 = vector.load %arg2[%c0_8, %c0_9] : memref<8x1xf32, #tpu.memory_space<vmem>>, vector<8x1xf32>
    %25 = vector.broadcast %24 : vector<8x1xf32> to vector<8x32xf32>
    %26 = arith.addf %23, %25 : vector<8x32xf32>
    %cst_10 = arith.constant 0.000000e+00 : f32
    %27 = vector.broadcast %cst_10 : f32 to vector<8x32xf32>
    %28 = arith.maximumf %26, %27 : vector<8x32xf32>
    %29 = vector.extract_strided_slice %28 {offsets = [0, 0], sizes = [8, 16], strides = [1, 1]} : vector<8x32xf32> to vector<8x16xf32>
    %c0_11 = arith.constant 0 : index
    %c0_12 = arith.constant 0 : index
    %c0_13 = arith.constant 0 : index
    %30 = vector.load %arg3[%c0_11, %c0_12, %c0_13] : memref<2x8x16xf32, #tpu.memory_space<vmem>>, vector<1x8x16xf32>
    %31 = vector.shape_cast %30 : vector<1x8x16xf32> to vector<8x16xf32>
    %32 = vector.shape_cast %29 : vector<8x16xf32> to vector<1x8x16xf32>
    tpu.vector_store %arg3[%c0_11, %c0_12, %c0_13], %32 {strides = array<i32>} : memref<2x8x16xf32, #tpu.memory_space<vmem>>, vector<1x8x16xf32>,
    %33 = vector.extract_strided_slice %28 {offsets = [0, 16], sizes = [8, 16], strides = [1, 1]} : vector<8x32xf32> to vector<8x16xf32>
    %c1 = arith.constant 1 : index
    %c0_14 = arith.constant 0 : index
    %c0_15 = arith.constant 0 : index
    %34 = vector.load %arg3[%c1, %c0_14, %c0_15] : memref<2x8x16xf32, #tpu.memory_space<vmem>>, vector<1x8x16xf32>
    %35 = vector.shape_cast %34 : vector<1x8x16xf32> to vector<8x16xf32>
    %36 = vector.shape_cast %33 : vector<8x16xf32> to vector<1x8x16xf32>
    tpu.vector_store %arg3[%c1, %c0_14, %c0_15], %36 {strides = array<i32>} : memref<2x8x16xf32, #tpu.memory_space<vmem>>, vector<1x8x16xf32>,
    return
  }
}

</mosaic_0001>

<bundles_post_ra>
// kernel: tpu_custom_call.1
= control target key start
LH: loop header
LB: loop body
LE: loop exit
PB: predicated region body
PF: predicated region fallthrough
CT: control target
= control target key end

     0   :  { %8 = vsyncpa [#allocation3], 0  ;;  %s276_s0 = inlined_call_operand.vmem [shape: f32[2,4,8], index: 0, kind: input, shape index: {}]   ;;  %s277_s1 = inlined_call_operand.hbm [shape: f32[8,12], index: 1, kind: input, shape index: {}]   ;;  %s278_s2 = inlined_call_operand.vmem [shape: f32[8,1], index: 2, kind: input, shape index: {}]   ;;  %s279_s3 = inlined_call_operand.hbm [shape: f32[2,8,16], index: 3, kind: output, shape index: {}]  }
   0x1   :  { %9 = vsyncpa [#allocation4], 0  ;;  %s17_s14 = sshll.u32 %s277_s1, 4  ;;  %s219_s15 = smov [#allocation2]   ;;  %s18_s14 = int_to_ptr.hbm [resolvable:$true] %s17_s14 }
   0x2   :  { %s19_s16 = sshll.u32 %s219_s15, 4  ;;  %s20_s16 = int_to_ptr.vmem [resolvable:$true] %s19_s16 }
   0x3   :  { %22 = dma.hbm_to_vmem [thread:$0]  %s18_s14, 128, %s20_s16, [#allocation3]  }
   0x4   :  { %215 = dma.done.wait [#allocation3], 128  }
   0x5   :  { %216 = vsyncadd [#allocation3], 4294967168  ;;  %v30_v0 = vld [vmem:[%s276_s0 + $0x4] sm:$0xf]  ;;  %v29_v1 = vld [vmem:[%s276_s0] sm:$0xf] }
   0x6   :  { %s220_s21 = smov 127   ;;  %s221_s22 = smov 16   ;;  %v37_v2 = vrot.slane %v29_v1, 4  ;;  %vm39_vm0 = vcmask 1043456   ;;  %v52_v4 = vrot.slane %v30_v0, 4  ;;  %vm44_vm1 = vcmask 56320  }
   0x7   :  { %55 = vrot.lane.b32.xlu1 %v30_v0, %s220_s21  ;;  %41 = vrot.lane.b32.xlu0 %v29_v1, %s220_s21  ;;  %s222_s1 = smov 1   ;;  %s223_s23 = smov 8   ;;  %vm35_vm2 = vcmask 7168   ;;  %v93_v13 = vld [vmem:[%s278_s2] sm:$0xff]  ;;  %v225_v14 = vmov 0   ;;  %vm83_vm3 = vcmask 64512  }
   0x8   :  { %71 = vrot.lane.b32.xlu2 %v30_v0, %s221_s22  ;;  %v46_v3 = vsel %vm39_vm0, %v29_v1, %v37_v2  ;;  %v59_v5 = vsel %vm39_vm0, %v30_v0, %v52_v4  ;;  %s224_s24 = smov 24   ;;  %165 = vset.pattern.permute.xlu1 %v225_v14  ;;  %vm86_vm4 = vcmask 130048   ;;  %vm89_vm5 = vcmask 195584   ;;  %v92_v29 = vld [vmem:[#allocation2] sm:$0xff]  ;;  %s226_s2 = smov 112  }
   0x9   :  { %166 = vset.pattern.permute.xlu0 %v225_v14  ;;  %vm99_vm6 = vcmask 97280   ;;  %s227_s26 = smov [#allocation5]   ;;  %s140_s30 = sshll.u32 %s279_s3, 4  ;;  %s141_s30 = int_to_ptr.hbm [resolvable:$true] %s140_s30 }
   0xa   :  { %s138_s27 = sshll.u32 %s227_s26, 4  ;;  %s228_s4 = smov 128   ;;  %s139_s27 = int_to_ptr.vmem [resolvable:$true] %s138_s27 }
   0xf   :  { %48 = vrot.lane.b32.xlu0 %v30_v0, %s222_s1  ;;  %32 = vrot.lane.b32.xlu1 %v29_v1, %s222_s1 }
  0x17   :  { %62 = vrot.lane.b32.xlu0 %v46_v3, %s223_s23 }
  0x1f   :  { %77 = vrot.lane.b32.xlu0 %v59_v5, %s224_s24 }
  0x62   :  { %v72_v15 = vpop.permute.xlu2 %71 }
  0x79   :  { %v56_v6 = vpop.permute.xlu1 %55  ;;  %v42_v7 = vpop.permute.xlu0 %41 }
  0x7a   :  { %v58_v8 = vsel %vm44_vm1, %v56_v6, 0.0  ;;  %v45_v9 = vsel %vm44_vm1, %v42_v7, 0.0 }
  0x7b   :  { %79 = vrot.lane.b32.xlu1 %v58_v8, %s224_s24  ;;  %64 = vrot.lane.b32.xlu2 %v45_v9, %s223_s23 }
  0x81   :  { %v49_v10 = vpop.permute.xlu0 %48  ;;  %v33_v16 = vpop.permute.xlu1 %32 }
  0x82   :  { %v51_v11 = vsel %vm35_vm2, 0.0, %v49_v10  ;;  %v36_v19 = vsel %vm35_vm2, 0.0, %v33_v16 }
  0x83   :  { %v54_v12 = vsel %vm39_vm0, %v51_v11, %v52_v4  ;;  %96 = vperm.xlu1 %165, %v93_v13   ;;  %v40_v20 = vsel %vm39_vm0, %v36_v19, %v37_v2 }
  0x84   :  { %69 = vrot.lane.b32.xlu2 %v54_v12, %s221_s22 }
  0x89   :  { %v63_v18 = vpop.permute.xlu0 %62 }
  0x8a   :  { %v84_v23 = vsel %vm83_vm3, %v40_v20, %v63_v18 }
  0x91   :  { %v78_v25 = vpop.permute.xlu0 %77 }
  0xd5   :  { %v65_v17 = vpop.permute.xlu2 %64 }
  0xd6   :  { %v85_v21 = vsel %vm83_vm3, %v29_v1, %v65_v17 }
  0xd7   :  { %v88_v27 = vsel %vm86_vm4, %v85_v21, %v72_v15 }
  0xde   :  { %v70_v22 = vpop.permute.xlu2 %69 }
  0xdf   :  { %v87_v24 = vsel %vm86_vm4, %v84_v23, %v70_v22 }
  0xe0   :  { %v90_v30 = vsel %vm89_vm5, %v87_v24, %v78_v25 }
  0xed   :  { %v80_v26 = vpop.permute.xlu1 %79 }
  0xee   :  { %v91_v28 = vsel %vm89_vm5, %v88_v27, %v80_v26 }
  0xef   :  { %153 = vmatpush.msk.msra.mxu0 %vm39_vm0, %v91_v28 }
  0xf1   :  { %121 = vmatpush.msra.mxu0 %v90_v30 }
  0xf2   :  { %154 = vmatmul.msk.f32.vlgmr.msra.gmra.mxu0 %vm99_vm6, %v92_v29 }
  0xf5   :  { %v97_v31 = vpop.permute.xlu1 %96 }
 0x16f   :  { %v123_v32 = vpop.f32.mrf.mxu0 }
 0x170   :  { %v124_v33 = vadd.f32 %v123_v32, %v97_v31 }
 0x172   :  { %v126_v34 = vmax.f32 %v124_v33, 0.0 }
 0x174   :  { %127 = vst.msk [vmem:[#allocation5] sm:$0xff] %vm86_vm4, %v126_v34  ;;  %129 = vrot.lane.b32.xlu2 %v126_v34, %s226_s2 }
 0x1ce   :  { %v130_v35 = vpop.permute.xlu2 %129 }
 0x1cf   :  { %133 = vst.msk [vmem:[#allocation5 + $0x8] sm:$0xff] %vm86_vm4, %v130_v35 }
 0x1d0   :  { %146 = dma.vmem_to_hbm [thread:$0]  %s139_s27, 256, %s141_s30, [#allocation4], %s228_s4, %s228_s4, %s223_s23  }
 0x1d1   :  { %217 = dma.done.wait [#allocation4], 256  }
 0x1d2   :  { %218 = vsyncadd [#allocation4], 4294967040 }
 0x1d3   :  { %151 = vsyncpa [#allocation3], 1 }
 0x1d4   :  { %152 = vsyncpa [#allocation4], 1 }

</bundles_post_ra>
